<compile_context>
chip_gen: v5e
topology: v5e:2x2
jax: 0.10.0
libtpu: 0.0.40
codegen_flags: <defaults>
</compile_context>

<pallas_src>
import jax
import jax.numpy as jnp
from jax.experimental import pallas as pl
from jax.experimental.pallas import tpu as pltpu

LANE = 128
SUBLANE = 8


def _round_up(x, m):
    return ((x + m - 1) // m) * m


def _sumsq_kernel(x_ref, o_ref):
    # x_ref: (1, TR, 128) block of one batch's rows; o_ref: (1, 1, 1, 1) partial.
    xf = x_ref[...].astype(jnp.float32)
    ssq = jnp.sum(xf * xf, keepdims=True)       # (1, 1, 1) f32 partial sum
    o_ref[0] = ssq


def _scale_kernel(x_ref, inv_ref, r_ref, a_ref, o_ref):
    # x_ref/o_ref: (1, TR, 128); inv_ref: (1, 1, 1) per-batch 1/denom;
    # r_ref/a_ref: (TR, 1) per-row rescale/affine.
    scale = r_ref[...][None] * inv_ref[...]     # fold rescale into reciprocal: (1, TR, 1)
    bias = a_ref[...][None]                     # (1, TR, 1)
    xf = x_ref[...].astype(jnp.float32)
    o_ref[...] = (xf * scale + bias).astype(o_ref.dtype)


def l2norm_layer(x, rescale, affine, *, max_row_tile=1024):
    """x: (N, C, D, H, W); rescale/affine: (1, C, 1, 1, 1) -> same-shape output."""
    N, C, D, H, W = x.shape
    S = D * H * W
    dtype = x.dtype
    itemsize = jnp.dtype(dtype).itemsize

    # ---- lane-dense / sublane-full layout: (N, rows, 128) ------------------
    s_rows = pl.cdiv(S, LANE)
    S_pad = s_rows * LANE
    x3 = x.reshape(N, C, S)
    if S_pad != S:
        # explicit zero-fill: padded elements add 0 to the sum of squares
        x3 = jnp.pad(x3, ((0, 0), (0, 0), (0, S_pad - S)))

    R = C * s_rows
    TR = min(_round_up(R, SUBLANE), max_row_tile)   # row tile, multiple of 8
    R_pad = _round_up(R, TR)
    n_tiles = R_pad // TR

    x4 = x3.reshape(N, R, LANE)
    if R_pad != R:
        x4 = jnp.pad(x4, ((0, 0), (0, R_pad - R), (0, 0)))

    r_rows = jnp.repeat(rescale.reshape(C).astype(jnp.float32), s_rows)
    a_rows = jnp.repeat(affine.reshape(C).astype(jnp.float32), s_rows)
    if R_pad != R:
        r_rows = jnp.pad(r_rows, (0, R_pad - R))
        a_rows = jnp.pad(a_rows, (0, R_pad - R))
    r_rows = r_rows.reshape(R_pad, 1)
    a_rows = a_rows.reshape(R_pad, 1)

    blk_bytes = TR * LANE * itemsize            # one (TR, 128) x / out block

    # ---- pass 1: per-(batch, row-tile) partial sum of squares --------------
    vmem1 = int(min(32 << 20, max(16 << 20, 4 * blk_bytes + (2 << 20))))
    partial = pl.pallas_call(
        _sumsq_kernel,
        out_shape=jax.ShapeDtypeStruct((N, n_tiles, 1, 1), jnp.float32),
        grid_spec=pltpu.PrefetchScalarGridSpec(
            num_scalar_prefetch=0,
            grid=(N, n_tiles),
            in_specs=[pl.BlockSpec((1, TR, LANE), lambda n, t: (n, t, 0))],
            out_specs=pl.BlockSpec((1, 1, 1, 1), lambda n, t: (n, t, 0, 0)),
        ),
        compiler_params=pltpu.CompilerParams(
            dimension_semantics=("parallel", "parallel"),
            vmem_limit_bytes=vmem1,
        ),
    )(x4)

    # tiny per-batch scalar math in XLA between the passes
    sumsq = jnp.sum(partial.reshape(N, n_tiles), axis=1)            # (N,)
    norm = jnp.sqrt(sumsq)
    denom = jnp.maximum(jnp.sqrt(norm), jnp.float32(1e-4))          # clamp(sqrt(norm), 1e-4)
    inv = (jnp.float32(1.0) / denom).astype(jnp.float32).reshape(N, 1, 1)

    # ---- pass 2: out = x * (rescale * inv) + affine -------------------------
    vmem2 = int(min(32 << 20, max(16 << 20, 8 * blk_bytes + (2 << 20))))
    out4 = pl.pallas_call(
        _scale_kernel,
        out_shape=jax.ShapeDtypeStruct((N, R_pad, LANE), dtype),
        grid_spec=pltpu.PrefetchScalarGridSpec(
            num_scalar_prefetch=0,
            grid=(N, n_tiles),
            in_specs=[
                pl.BlockSpec((1, TR, LANE), lambda n, t: (n, t, 0)),
                pl.BlockSpec((1, 1, 1), lambda n, t: (n, 0, 0)),
                pl.BlockSpec((TR, 1), lambda n, t: (t, 0)),
                pl.BlockSpec((TR, 1), lambda n, t: (t, 0)),
            ],
            out_specs=pl.BlockSpec((1, TR, LANE), lambda n, t: (n, t, 0)),
        ),
        compiler_params=pltpu.CompilerParams(
            dimension_semantics=("parallel", "parallel"),
            vmem_limit_bytes=vmem2,
        ),
    )(x4, inv, r_rows, a_rows)

    # undo row/spatial padding and restore NCDHW
    out = out4[:, :R, :].reshape(N, C, S_pad)[:, :, :S].reshape(N, C, D, H, W)
    return out


def _reference(x, rescale, affine):
    N = x.shape[0]
    x_flat = x.reshape(N, -1)
    norm = jnp.linalg.norm(x_flat, ord=2, axis=1, keepdims=True)
    normalized = (x_flat / jnp.maximum(jnp.sqrt(norm), 1e-4)).reshape(x.shape)
    return normalized * rescale + affine


if __name__ == "__main__":
    key = jax.random.PRNGKey(0)
    N, C, D, H, W = 2, 4, 4, 8, 8
    x = jax.random.normal(key, (N, C, D, H, W), dtype=jnp.float32)

    # Deterministic parameter init matching the module's __init__:
    # rescale_param = ones(1, C, 1, 1, 1) * 10.0 ; affine_param = zeros.
    rescale = jnp.full((1, C, 1, 1, 1), 10.0, dtype=jnp.float32)
    affine = jnp.zeros((1, C, 1, 1, 1), dtype=jnp.float32)

    out = l2norm_layer(x, rescale, affine)
    out = jax.block_until_ready(out)

    ref = _reference(x, rescale, affine)
    assert out.shape == x.shape
    assert jnp.allclose(out, ref, atol=1e-5, rtol=1e-5), float(
        jnp.max(jnp.abs(out - ref)))

    print("KERNEL_OK")
</pallas_src>

<mosaic_0001>
module attributes {stable_mosaic.version = 11 : i64} {
  func.func @_sumsq_kernel(%arg0: i32, %arg1: i32, %arg2: memref<1x8x128xf32, #tpu.memory_space<vmem>>, %arg3: memref<1x1x1x1xf32, #tpu.memory_space<vmem>>) attributes {dimension_semantics = [#tpu.dimension_semantics<parallel>, #tpu.dimension_semantics<parallel>], iteration_bounds = array<i64: 2, 1>, scalar_prefetch = 0 : i64, scratch_operands = 0 : i64, tpu.core_type = #tpu.core_type<tc>, window_params = [{transform_indices = @transform_0, window_bounds = array<i64: 1, 8, 128>}, {transform_indices = @transform_1, window_bounds = array<i64: 1, 1, 1, 1>}]} {
    %c0 = arith.constant 0 : index
    %c0_0 = arith.constant 0 : index
    %c0_1 = arith.constant 0 : index
    %0 = vector.load %arg2[%c0, %c0_0, %c0_1] : memref<1x8x128xf32, #tpu.memory_space<vmem>>, vector<1x8x128xf32>
    %1 = arith.mulf %0, %0 : vector<1x8x128xf32>
    %2 = vector.shape_cast %1 : vector<1x8x128xf32> to vector<1x1x8x128xf32>
    %cst = arith.constant dense<0.000000e+00> : vector<1xf32>
    %3 = vector.multi_reduction <add>, %2, %cst [1, 2, 3] : vector<1x1x8x128xf32> to vector<1xf32>
    %4 = vector.shape_cast %3 : vector<1xf32> to vector<1x1x1x1xf32>
    %5 = vector.extract %4[0, 0, 0, 0] : f32 from vector<1x1x1x1xf32>
    %6 = vector.broadcast %5 : f32 to vector<1x1x1xf32>
    %c0_2 = arith.constant 0 : index
    %c0_3 = arith.constant 0 : index
    %c0_4 = arith.constant 0 : index
    %c0_5 = arith.constant 0 : index
    %7 = vector.load %arg3[%c0_2, %c0_3, %c0_4, %c0_5] : memref<1x1x1x1xf32, #tpu.memory_space<vmem>>, vector<1x1x1x1xf32>
    %8 = vector.shape_cast %7 : vector<1x1x1x1xf32> to vector<1x1x1xf32>
    %9 = vector.shape_cast %6 : vector<1x1x1xf32> to vector<1x1x1x1xf32>
    tpu.vector_store %arg3[%c0_2, %c0_3, %c0_4, %c0_5], %9 {strides = array<i32>} : memref<1x1x1x1xf32, #tpu.memory_space<vmem>>, vector<1x1x1x1xf32>,
    return
  }
  func.func @transform_0(%arg0: i32, %arg1: i32) -> (i32, i32, i32) {
    %c0_i32 = arith.constant 0 : i32
    %c0_i32_0 = arith.constant 0 : i32
    return %arg0, %arg1, %c0_i32 : i32, i32, i32
  }
  func.func @transform_1(%arg0: i32, %arg1: i32) -> (i32, i32, i32, i32) {
    %c0_i32 = arith.constant 0 : i32
    %c0_i32_0 = arith.constant 0 : i32
    %c0_i32_1 = arith.constant 0 : i32
    return %arg0, %arg1, %c0_i32, %c0_i32_0 : i32, i32, i32, i32
  }
}

</mosaic_0001>

<bundles_post_ra>
// kernel: tpu_custom_call.1
= control target key start
LH: loop header
LB: loop body
LE: loop exit
PB: predicated region body
PF: predicated region fallthrough
CT: control target
= control target key end

     0   :  { %6 = vsyncpa [#allocation3], 0  ;;  %s494_s0 = inlined_call_operand.hbm [shape: f32[2,8,128], index: 0, kind: input, shape index: {}]   ;;  %s495_s1 = inlined_call_operand.vmem [shape: f32[2,1,1,1], index: 1, kind: output, shape index: {}]  }
   0x1   :  { %8 = vsyncpa [#allocation3 + $0x1], 0  ;;  %s406_s6 = smov 0   ;;  %s408_s7 = smov 0  }
   0x2   :  { %s410_s8 = smov 0   ;;  %s412_s9 = smov 0  }
   0x3   :  { %s414_s10 = smov 0   ;;  %s416_s11 = smov 0  }
   0x4 LB: > { %s247_s12 = sadd.s32 4294967295, %s394_s11   ;;  %s26_s13 = sadd.s32 1, %s390_s10  ;;  %s394_s11 = sphi %s416_s11, %s14_s11   ;;  %s390_s10 = sphi %s414_s10, %s502_s10   ;;  %s386_s9 = sphi %s412_s9, %s501_s9   ;;  %s382_s8 = sphi %s410_s8, %s500_s8   ;;  %s378_s7 = sphi %s408_s7, %s499_s7   ;;  %s374_s6 = sphi %s406_s6, %s498_s6  }
   0x5   : > { %p28_p0 = scmp.ge.s32.totalorder %s26_s13, 2  ;;  %s35_s14 = sadd.s32 1, %s382_s8 }
   0x6   : > { %p42_p1 = scmp.ne.s32.totalorder %s382_s8, %s378_s7  ;;  %p43_p2 = scmp.eq.s32.totalorder %s394_s11, 0 }
   0x7   : > { %s504_s13 = smov (%p28_p0, %s26_s13), 0  ;;  %p48_p4 = scmp.ne.s32.totalorder %s378_s7, %s374_s6 }
   0x8   : > { %p442_p3 = por %p43_p2, %p42_p1  ;;  %s30_s16 = ssub.s32 %s390_s10, %s504_s13 }
   0x9   : > { %p49_p5 = scmp.eq.s32.totalorder %s247_s12, 0  ;;  %p33_p6 = scmp.eq.s32.totalorder %s30_s16, 0 }
   0xa   : > { %p265_p8 = scmp.lt.s32.totalorder %s394_s11, 2  ;;  %s100_s19 = sand.u32 1, %s382_s8  }
   0xb   : > { %p449_p7 = por %p49_p5, %p48_p4  ;;  %s252_s20 = sshll.u32 %s390_s10, 3 }
   0xc   : > { %s455_s18 = scalar_select %p33_p6, %s382_s8, %s35_s14  }
   0xd   : > { %s251_s21 = sshll.u32 %s100_s19, 3  ;;  %s109_s24 = scalar_lea.hbm %s494_s0, %s252_s20 }
   0xe   : > { %s111_s25 = sshll.u32 %s109_s24, 4  ;;  %s104_s26 = scalar_lea.vmem [#allocation2], %s251_s21  ;;  %s112_s25 = int_to_ptr.hbm [resolvable:$true] %s111_s25 }
   0xf   : > { %s113_s27 = sshll.u32 %s104_s26, 4  ;;  %p262_p9 = pnand %p265_p8, %p442_p3  ;;  %s114_s27 = int_to_ptr.vmem [resolvable:$true] %s113_s27 }
  0x10   : > { %p253_p10 = scmp.ge.s32.totalorder %s394_s11, 1  ;;  %p118_p11 = scmp.lt.s32.totalorder %s394_s11, 3 }
  0x11   : > { %s101_s28 = scalar_lea.sflag [#allocation3], %s100_s19 }
  0x12   : > { %264 = dma.hbm_to_vmem [thread:$0]  (!%p262_p9), %s112_s25, 128, %s114_s27, %s101_s28  }
  0x13   : > { %p119_p12 = pnand %p253_p10, %p118_p11 }
  0x14   : > { %s124_s29 = sand.u32 (!%p119_p12), 1, %s378_s7  }
  0x15   : > { %122 = sbr.rel (%p119_p12) target bundleno = 210 (0xd2), region = 24  ;;  %s254_s30 = sshll.u32 (!%p119_p12), %s124_s29, 3 }
  0x16   : > { %s125_s2 = scalar_lea.sflag (!%p119_p12), [#allocation3], %s124_s29  ;;  %s128_s3 = scalar_lea.vmem (!%p119_p12), [#allocation2], %s254_s30 }
  0x1a   : > { %369 = dma.done.wait (%p449_p7), %s125_s2, 128  }
  0x1b   : > { %371 = vsyncadd (%p449_p7), %s125_s2, 4294967168  ;;  %v155_v0 = vld [vmem:[%s128_s3] sm:$0xff]  ;;  %p149_p13 = scmp.lt.s32.totalorder %s386_s9, 1  ;;  %vm167_vm0 = vcmask 0  }
  0x1c   : > { %v156_v1 = vmul.f32 %v155_v0, %v155_v0 }
  0x1d   : > { %s506_s9 = smov (!%p149_p13, %s386_s9), 1 }
  0x1e   : > { %157 = vadd.xlane.f32.xlu0 %v156_v1  ;;  %s154_s6 = scalar_lea.vmem %s495_s1, %s506_s9 }
  0x91   : > { %v158_v2 = vpop.xlane.xlu0 %157 }
  0x92   : > { %v159_v3 = vrot.slane %v158_v2, 4 }
  0x94   : > { %v160_v4 = vadd.f32 %v159_v3, %v158_v2 }
  0x96   : > { %v161_v5 = vrot.slane %v160_v4, 2 }
  0x98   : > { %v162_v6 = vadd.f32 %v161_v5, %v160_v4 }
  0x9a   : > { %v163_v7 = vrot.slane %v162_v6, 1 }
  0x9c   : > { %v164_v8 = vadd.f32 %v163_v7, %v162_v6 }
  0x9e   : > { %257 = vpush %v164_v8 }
  0xcf   : > { %s258_s12 = spop %257 }
  0xd0   : > { %v166_v9 = vstv %s258_s12 }
  0xd1   : > { %168 = vst.msk [vmem:[%s154_s6] sm:$0x1] %vm167_vm0, %v166_v9 }
  0xd2 PF: > { %s14_s11 = sadd.s32 1, %s394_s11   ;;  %s498_s6 = smov %s378_s7 }
  0xd3   : > { %p11_p0 = scmp.ge.s32.totalorder %s14_s11, 4   ;;  %s499_s7 = smov %s382_s8 }
  0xd4   : > { %s500_s8 = smov %s455_s18  ;;  %s501_s9 = smov %s390_s10 }
  0xd5   : > { %s502_s10 = smov %s504_s13  ;;  %13 = sbr.rel (!%p11_p0) target bundleno = 4 (0x4), region = 64 }
  0xda   :  { %192 = vsyncpa [#allocation3], 1 }
  0xdb   :  { %194 = vsyncpa [#allocation3 + $0x1], 1 }

</bundles_post_ra>
